<compile_context>
chip_gen: v6e
topology: v6e:2x2x1
jax: 0.10.0
libtpu: 0.0.40
codegen_flags: <defaults>
</compile_context>

<pallas_src>
import math
import functools

import numpy as np
import jax
import jax.numpy as jnp
from jax.experimental import pallas as pl
from jax.experimental.pallas import tpu as pltpu


def _round_up(x, m):
    return ((x + m - 1) // m) * m


def _cdiv(a, b):
    return (a + b - 1) // b


def _cfn_kernel(q_ref, t_ref, phase_ref, mask_ref,
                w1_ref, b1_ref, w2_ref, b2_ref, w3_ref, b3_ref,
                w4a_ref, w4b_ref, b4_ref, w5_ref, b5_ref,
                wl_ref, bl_ref,
                out_ref,
                x5_ref,
                *, dof, use_mxu_pe):
    # Hidden stack is computed once per batch tile (voxel-tile index j == 0) into VMEM
    # scratch; every voxel tile j then only multiplies x5 by its slice of `last`.
    @pl.when(pl.program_id(1) == 0)
    def _():
        q = q_ref[...]                       # (TB, dof) f32
        t = t_ref[...]                       # (dof, in_dim_pad) f32

        if use_mxu_pe:
            pre = jnp.dot(q, t, precision=jax.lax.Precision.HIGHEST,
                          preferred_element_type=jnp.float32)
        else:
            # Exact f32 spread/scale on the VPU (dof broadcast multiply-adds); keeps the
            # MXU slot free and avoids the multi-pass HIGHEST matmul at the step head.
            pre = q[:, 0:1] * t[0:1, :]
            for d in range(1, dof):
                pre = pre + q[:, d:d + 1] * t[d:d + 1, :]

        # Single sin: cos block gets a +pi/2 phase offset; raw-q / padding columns pass
        # `pre` through via a precomputed lane mask (no iota, no second transcendental).
        cat_q = jnp.where(mask_ref[...] > 0.5,
                          jnp.sin(pre + phase_ref[...]),
                          pre)
        cat_q_bf = cat_q.astype(jnp.bfloat16)

        def linear_relu(x_bf, w_ref, b_ref):
            y = jnp.dot(x_bf, w_ref[...],
                        preferred_element_type=jnp.float32) + b_ref[...]
            return jnp.maximum(y, 0.0)

        x1 = linear_relu(cat_q_bf, w1_ref, b1_ref)       # dropout = identity (eval)
        x2 = linear_relu(x1.astype(jnp.bfloat16), w2_ref, b2_ref)
        x3 = linear_relu(x2.astype(jnp.bfloat16), w3_ref, b3_ref)

        # Skip-concat folded into fc4: relu(cat_q @ w4a + x3 @ w4b + b4)
        y4 = (jnp.dot(cat_q_bf, w4a_ref[...], preferred_element_type=jnp.float32)
              + jnp.dot(x3.astype(jnp.bfloat16), w4b_ref[...],
                        preferred_element_type=jnp.float32)
              + b4_ref[...])
        x4 = jnp.maximum(y4, 0.0)
        x5 = linear_relu(x4.astype(jnp.bfloat16), w5_ref, b5_ref)
        x5_ref[...] = x5.astype(jnp.bfloat16)

    # Per voxel tile: lane-dense output store.
    out = jnp.dot(x5_ref[...], wl_ref[...],
                  preferred_element_type=jnp.float32) + bl_ref[...]
    out_ref[...] = out.astype(out_ref.dtype)


def _const_spec(arr):
    """BlockSpec for a grid-invariant input: constant index map + single VMEM buffer."""
    nd = arr.ndim
    idx = lambda i, j: (0,) * nd
    try:
        return pl.BlockSpec(arr.shape, idx, pipeline_mode=pl.Buffered(1))
    except Exception:  # older jax without pipeline_mode: fall back to default buffering
        return pl.BlockSpec(arr.shape, idx)


def cfn_forward(q, params, *, L,
                max_tile_rows=1024,       # ~right for v7x (64 MiB VMEM); raise to 4096 on v6e
                max_tile_voxel=512,
                vmem_budget_bytes=40 << 20,
                vmem_limit_bytes=None,
                out_dtype=jnp.float32):
    """q: (B, dof) float32. params: dict of (weight, bias) per layer in PyTorch layout
    weight=(out, in), bias=(out,). Returns (B, voxel) in `out_dtype` (eval-mode forward)."""
    B, dof = q.shape
    in_dim = dof + 2 * L * dof
    hidden = params["fc1"][0].shape[0]
    voxel = params["last"][0].shape[0]

    in_dim_pad = _round_up(in_dim, 128)
    hidden_pad = _round_up(hidden, 128)
    out_itemsize = jnp.dtype(out_dtype).itemsize

    # ---- voxel (output / last-layer) tiling --------------------------------
    voxel_pad = _round_up(voxel, 128)
    tile_n_target = max(128, _round_up(min(max_tile_voxel, voxel_pad), 128))
    n_vox = _cdiv(voxel_pad, tile_n_target)
    tile_n = _round_up(_cdiv(voxel_pad, n_vox), 128)
    voxel_pad = n_vox * tile_n

    # ---- batch tiling from a VMEM byte budget -------------------------------
    const_bytes = (dof * in_dim_pad * 4 + 2 * in_dim_pad * 4          # T, phase, mask
                   + 2 * in_dim_pad * hidden_pad * 2                   # w1, w4a (bf16)
                   + 4 * hidden_pad * hidden_pad * 2                   # w2, w3, w4b, w5
                   + 6 * hidden_pad * 4)                               # biases (f32)
    wl_bufs = 1 if n_vox == 1 else 2
    const_bytes += wl_bufs * (hidden_pad * tile_n * 2 + tile_n * 4)    # wl / bl tiles
    per_row_bytes = (2 * dof * 4                  # q tile (double buffered)
                     + 2 * tile_n * out_itemsize   # out tile (double buffered)
                     + hidden_pad * 2              # x5 scratch (bf16)
                     + in_dim_pad * (4 + 4 + 2)    # pre + cat_q f32 + cat_q bf16
                     + 2 * hidden_pad * (4 + 2))   # live hidden activations
    avail = max(vmem_budget_bytes - const_bytes, 8 * per_row_bytes)
    tile_cap = max((avail // per_row_bytes) // 8 * 8, 8)

    n_steps = max(_cdiv(B, max_tile_rows), 2)      # >=2 steps so megacore can split batch
    tile_b = _round_up(_cdiv(B, n_steps), 8)
    tile_b = max(8, min(tile_b, tile_cap))
    B_pad = _round_up(B, tile_b)
    grid = (B_pad // tile_b, n_vox)

    # ---- positional-encoding tables -----------------------------------------
    # Kernel-internal cat_q layout: [sin block (L*dof) | cos block (L*dof) | q | pad].
    perm = np.asarray(
        [2 * i * dof + d for i in range(L) for d in range(dof)]
        + [(2 * i + 1) * dof + d for i in range(L) for d in range(dof)]
        + [2 * L * dof + d for d in range(dof)], dtype=np.int32)

    T = np.zeros((dof, in_dim_pad), np.float32)     # q @ T -> [scaled | scaled | q | 0]
    phase = np.zeros((1, in_dim_pad), np.float32)
    mask = np.zeros((1, in_dim_pad), np.float32)
    for i in range(L):
        s = (2.0 ** i) * math.pi
        for d in range(dof):
            T[d, i * dof + d] = s                   # sin block
            T[d, L * dof + i * dof + d] = s         # cos block
    for d in range(dof):
        T[d, 2 * L * dof + d] = 1.0                 # raw-q passthrough
    phase[0, L * dof:2 * L * dof] = 0.5 * math.pi   # sin(x + pi/2) = cos(x)
    mask[0, :2 * L * dof] = 1.0                     # sin/cos columns only
    T = jnp.asarray(T)
    phase = jnp.asarray(phase)
    mask = jnp.asarray(mask)

    # ---- weights (transposed, column-permuted, zero-padded, bf16) -----------
    def prep(name, n_in_pad, n_out_pad, row_perm=None):
        w, b = params[name]
        n_out, n_in = w.shape
        wt = jnp.asarray(w, jnp.float32).T          # (in, out)
        if row_perm is not None:
            wt = wt[row_perm, :]
        wt = jnp.pad(wt, ((0, n_in_pad - n_in), (0, n_out_pad - n_out)))
        bp = jnp.pad(jnp.asarray(b, jnp.float32),
                     (0, n_out_pad - n_out)).reshape(1, -1)
        return wt.astype(jnp.bfloat16), bp

    w1, b1 = prep("fc1", in_dim_pad, hidden_pad, perm)
    w2, b2 = prep("fc2", hidden_pad, hidden_pad)
    w3, b3 = prep("fc3", hidden_pad, hidden_pad)
    w5, b5 = prep("fc5", hidden_pad, hidden_pad)
    wl, bl = prep("last", hidden_pad, voxel_pad)

    w4t = jnp.asarray(params["fc4"][0], jnp.float32).T        # (in_dim + hidden, hidden)
    w4a = jnp.pad(w4t[:in_dim][perm, :],
                  ((0, in_dim_pad - in_dim), (0, hidden_pad - hidden))).astype(jnp.bfloat16)
    w4b = jnp.pad(w4t[in_dim:],
                  ((0, hidden_pad - hidden), (0, hidden_pad - hidden))).astype(jnp.bfloat16)
    b4 = jnp.pad(jnp.asarray(params["fc4"][1], jnp.float32),
                 (0, hidden_pad - hidden)).reshape(1, -1)

    # ---- batch padding -------------------------------------------------------
    q32 = jnp.asarray(q, jnp.float32)
    if B_pad != B:
        q32 = jnp.pad(q32, ((0, B_pad - B), (0, 0)))

    # ---- advisory cost estimate ---------------------------------------------
    flops_per_row = 2 * (dof * in_dim_pad
                         + in_dim_pad * hidden_pad
                         + 3 * hidden_pad * hidden_pad
                         + (in_dim_pad + hidden_pad) * hidden_pad
                         + hidden_pad * voxel_pad)
    const_hbm = (int(T.size + phase.size + mask.size) * 4
                 + sum(int(a.size) * a.dtype.itemsize
                       for a in (w1, b1, w2, b2, w3, b3, w4a, w4b, b4, w5, b5)))
    wl_hbm = (int(wl.size) * 2 + int(bl.size) * 4) * (grid[0] if n_vox > 1 else 1)
    cost = pl.CostEstimate(
        flops=int(B_pad) * int(flops_per_row),
        transcendentals=int(B_pad) * int(in_dim_pad),
        bytes_accessed=int(4 * B_pad * dof + out_itemsize * B_pad * voxel_pad
                           + const_hbm + wl_hbm))

    if vmem_limit_bytes is None:
        vmem_limit_bytes = min(int(vmem_budget_bytes) + (16 << 20), 100 << 20)
    cparams = pltpu.CompilerParams(
        dimension_semantics=("parallel", "arbitrary"),
        vmem_limit_bytes=int(vmem_limit_bytes))

    if n_vox > 1:
        wl_spec = pl.BlockSpec((hidden_pad, tile_n), lambda i, j: (0, j))
        bl_spec = pl.BlockSpec((1, tile_n), lambda i, j: (0, j))
    else:
        wl_spec = _const_spec(wl)
        bl_spec = _const_spec(bl)

    kernel = functools.partial(_cfn_kernel, dof=dof, use_mxu_pe=(dof > 16))

    out = pl.pallas_call(
        kernel,
        out_shape=jax.ShapeDtypeStruct((B_pad, voxel_pad), out_dtype),
        grid_spec=pltpu.PrefetchScalarGridSpec(
            num_scalar_prefetch=0,
            grid=grid,
            in_specs=[
                pl.BlockSpec((tile_b, dof), lambda i, j: (i, 0)),
                _const_spec(T), _const_spec(phase), _const_spec(mask),
                _const_spec(w1), _const_spec(b1),
                _const_spec(w2), _const_spec(b2),
                _const_spec(w3), _const_spec(b3),
                _const_spec(w4a), _const_spec(w4b), _const_spec(b4),
                _const_spec(w5), _const_spec(b5),
                wl_spec, bl_spec,
            ],
            out_specs=pl.BlockSpec((tile_b, tile_n), lambda i, j: (i, j)),
            scratch_shapes=[pltpu.VMEM((tile_b, hidden_pad), jnp.bfloat16)],
        ),
        compiler_params=cparams,
        cost_estimate=cost,
    )(q32, T, phase, mask, w1, b1, w2, b2, w3, b3, w4a, w4b, b4, w5, b5, wl, bl)

    return out[:B, :voxel]


def cfn_reference(q, params, *, L):
    """Pure-JAX f32 reference mirroring the PyTorch forward (eval mode)."""
    feats = []
    for i in range(L):
        s = (2.0 ** i) * math.pi
        feats.append(jnp.sin(s * q))
        feats.append(jnp.cos(s * q))
    cat_q = jnp.concatenate(feats + [q], axis=1)

    def lin(x, name, relu=True):
        w, b = params[name]
        y = x @ w.T + b
        return jnp.maximum(y, 0.0) if relu else y

    x1 = lin(cat_q, "fc1")
    x2 = lin(x1, "fc2")
    x3 = lin(x2, "fc3")
    x4 = lin(jnp.concatenate([cat_q, x3], axis=1), "fc4")
    x5 = lin(x4, "fc5")
    return lin(x5, "last", relu=False)


def init_params(key, *, dof, L, hidden, voxel):
    """Matches CFN._initialize_weights: weight ~ N(0, 0.01), bias = 0."""
    in_dim = dof + 2 * L * dof
    layer4 = hidden + in_dim
    shapes = {
        "fc1": (hidden, in_dim),
        "fc2": (hidden, hidden),
        "fc3": (hidden, hidden),
        "fc4": (hidden, layer4),
        "fc5": (hidden, hidden),
        "last": (voxel, hidden),
    }
    params = {}
    for name, shp in shapes.items():
        key, sub = jax.random.split(key)
        w = 0.01 * jax.random.normal(sub, shp, dtype=jnp.float32)
        b = jnp.zeros((shp[0],), dtype=jnp.float32)
        params[name] = (w, b)
    return params


if __name__ == "__main__":
    # Small config consistent with the module: opt.dof, opt.L, opt.hidden, opt.voxel
    dof, L, hidden, voxel = 4, 4, 32, 16
    B = 16

    key = jax.random.PRNGKey(0)
    kq, kp = jax.random.split(key)
    q = jax.random.uniform(kq, (B, dof), dtype=jnp.float32)
    params = init_params(kp, dof=dof, L=L, hidden=hidden, voxel=voxel)

    out = jax.block_until_ready(cfn_forward(q, params, L=L))
    ref = cfn_reference(q, params, L=L)

    assert out.shape == (B, voxel)
    # bf16 MXU operands (f32 accumulate) => relaxed but tight-for-these-magnitudes tolerance.
    assert jnp.allclose(out, ref, rtol=5e-2, atol=1e-5), (
        "mismatch vs reference, max abs diff = "
        f"{float(jnp.max(jnp.abs(out - ref)))}")

    # TODO(synk): dropout layers are identity here (eval/inference semantics);
    # training-mode dropout would need pltpu.prng_* in-kernel masking.
    print("KERNEL_OK")
</pallas_src>

<mosaic_0001>
module attributes {stable_mosaic.version = 11 : i64} {
  func.func @_cfn_kernel(%arg0: i32, %arg1: i32, %arg2: memref<8x4xf32, #tpu.memory_space<vmem>>, %arg3: memref<4x128xf32, #tpu.memory_space<vmem>>, %arg4: memref<1x128xf32, #tpu.memory_space<vmem>>, %arg5: memref<1x128xf32, #tpu.memory_space<vmem>>, %arg6: memref<128x128xbf16, #tpu.memory_space<vmem>>, %arg7: memref<1x128xf32, #tpu.memory_space<vmem>>, %arg8: memref<128x128xbf16, #tpu.memory_space<vmem>>, %arg9: memref<1x128xf32, #tpu.memory_space<vmem>>, %arg10: memref<128x128xbf16, #tpu.memory_space<vmem>>, %arg11: memref<1x128xf32, #tpu.memory_space<vmem>>, %arg12: memref<128x128xbf16, #tpu.memory_space<vmem>>, %arg13: memref<128x128xbf16, #tpu.memory_space<vmem>>, %arg14: memref<1x128xf32, #tpu.memory_space<vmem>>, %arg15: memref<128x128xbf16, #tpu.memory_space<vmem>>, %arg16: memref<1x128xf32, #tpu.memory_space<vmem>>, %arg17: memref<128x128xbf16, #tpu.memory_space<vmem>>, %arg18: memref<1x128xf32, #tpu.memory_space<vmem>>, %arg19: memref<8x128xf32, #tpu.memory_space<vmem>>, %arg20: memref<8x128xbf16, #tpu.memory_space<vmem>>) attributes {dimension_semantics = [#tpu.dimension_semantics<parallel>, #tpu.dimension_semantics<arbitrary>], iteration_bounds = array<i64: 2, 1>, scalar_prefetch = 0 : i64, scratch_operands = 1 : i64, tpu.core_type = #tpu.core_type<tc>, window_params = [{transform_indices = @transform_0, window_bounds = array<i64: 8, 4>}, {pipeline_mode = #tpu.pipeline_mode<synchronous>, transform_indices = @transform_1, window_bounds = array<i64: 4, 128>}, {pipeline_mode = #tpu.pipeline_mode<synchronous>, transform_indices = @transform_2, window_bounds = array<i64: 1, 128>}, {pipeline_mode = #tpu.pipeline_mode<synchronous>, transform_indices = @transform_3, window_bounds = array<i64: 1, 128>}, {pipeline_mode = #tpu.pipeline_mode<synchronous>, transform_indices = @transform_4, window_bounds = array<i64: 128, 128>}, {pipeline_mode = #tpu.pipeline_mode<synchronous>, transform_indices = @transform_5, window_bounds = array<i64: 1, 128>}, {pipeline_mode = #tpu.pipeline_mode<synchronous>, transform_indices = @transform_6, window_bounds = array<i64: 128, 128>}, {pipeline_mode = #tpu.pipeline_mode<synchronous>, transform_indices = @transform_7, window_bounds = array<i64: 1, 128>}, {pipeline_mode = #tpu.pipeline_mode<synchronous>, transform_indices = @transform_8, window_bounds = array<i64: 128, 128>}, {pipeline_mode = #tpu.pipeline_mode<synchronous>, transform_indices = @transform_9, window_bounds = array<i64: 1, 128>}, {pipeline_mode = #tpu.pipeline_mode<synchronous>, transform_indices = @transform_10, window_bounds = array<i64: 128, 128>}, {pipeline_mode = #tpu.pipeline_mode<synchronous>, transform_indices = @transform_11, window_bounds = array<i64: 128, 128>}, {pipeline_mode = #tpu.pipeline_mode<synchronous>, transform_indices = @transform_12, window_bounds = array<i64: 1, 128>}, {pipeline_mode = #tpu.pipeline_mode<synchronous>, transform_indices = @transform_13, window_bounds = array<i64: 128, 128>}, {pipeline_mode = #tpu.pipeline_mode<synchronous>, transform_indices = @transform_14, window_bounds = array<i64: 1, 128>}, {pipeline_mode = #tpu.pipeline_mode<synchronous>, transform_indices = @transform_15, window_bounds = array<i64: 128, 128>}, {pipeline_mode = #tpu.pipeline_mode<synchronous>, transform_indices = @transform_16, window_bounds = array<i64: 1, 128>}, {transform_indices = @transform_17, window_bounds = array<i64: 8, 128>}]} {
    %c0_i32 = arith.constant 0 : i32
    %0 = arith.cmpi eq, %arg1, %c0_i32 : i32
    %1 = arith.extui %0 : i1 to i32
    %c0_i32_0 = arith.constant 0 : i32
    %2 = arith.cmpi ne, %1, %c0_i32_0 : i32
    scf.if %2 {
      %c0_8 = arith.constant 0 : index
      %c0_9 = arith.constant 0 : index
      %10 = vector.load %arg2[%c0_8, %c0_9] : memref<8x4xf32, #tpu.memory_space<vmem>>, vector<8x4xf32>
      %c0_10 = arith.constant 0 : index
      %c0_11 = arith.constant 0 : index
      %11 = vector.load %arg3[%c0_10, %c0_11] : memref<4x128xf32, #tpu.memory_space<vmem>>, vector<4x128xf32>
      %12 = vector.extract_strided_slice %10 {offsets = [0, 0], sizes = [8, 1], strides = [1, 1]} : vector<8x4xf32> to vector<8x1xf32>
      %13 = vector.extract_strided_slice %11 {offsets = [0, 0], sizes = [1, 128], strides = [1, 1]} : vector<4x128xf32> to vector<1x128xf32>
      %14 = vector.broadcast %12 : vector<8x1xf32> to vector<8x128xf32>
      %15 = vector.broadcast %13 : vector<1x128xf32> to vector<8x128xf32>
      %16 = arith.mulf %14, %15 : vector<8x128xf32>
      %17 = vector.extract_strided_slice %10 {offsets = [0, 1], sizes = [8, 1], strides = [1, 1]} : vector<8x4xf32> to vector<8x1xf32>
      %18 = vector.extract_strided_slice %11 {offsets = [1, 0], sizes = [1, 128], strides = [1, 1]} : vector<4x128xf32> to vector<1x128xf32>
      %19 = vector.broadcast %17 : vector<8x1xf32> to vector<8x128xf32>
      %20 = vector.broadcast %18 : vector<1x128xf32> to vector<8x128xf32>
      %21 = arith.mulf %19, %20 : vector<8x128xf32>
      %22 = arith.addf %16, %21 : vector<8x128xf32>
      %23 = vector.extract_strided_slice %10 {offsets = [0, 2], sizes = [8, 1], strides = [1, 1]} : vector<8x4xf32> to vector<8x1xf32>
      %24 = vector.extract_strided_slice %11 {offsets = [2, 0], sizes = [1, 128], strides = [1, 1]} : vector<4x128xf32> to vector<1x128xf32>
      %25 = vector.broadcast %23 : vector<8x1xf32> to vector<8x128xf32>
      %26 = vector.broadcast %24 : vector<1x128xf32> to vector<8x128xf32>
      %27 = arith.mulf %25, %26 : vector<8x128xf32>
      %28 = arith.addf %22, %27 : vector<8x128xf32>
      %29 = vector.extract_strided_slice %10 {offsets = [0, 3], sizes = [8, 1], strides = [1, 1]} : vector<8x4xf32> to vector<8x1xf32>
      %30 = vector.extract_strided_slice %11 {offsets = [3, 0], sizes = [1, 128], strides = [1, 1]} : vector<4x128xf32> to vector<1x128xf32>
      %31 = vector.broadcast %29 : vector<8x1xf32> to vector<8x128xf32>
      %32 = vector.broadcast %30 : vector<1x128xf32> to vector<8x128xf32>
      %33 = arith.mulf %31, %32 : vector<8x128xf32>
      %34 = arith.addf %28, %33 : vector<8x128xf32>
      %c0_12 = arith.constant 0 : index
      %c0_13 = arith.constant 0 : index
      %35 = vector.load %arg5[%c0_12, %c0_13] : memref<1x128xf32, #tpu.memory_space<vmem>>, vector<1x128xf32>
      %cst_14 = arith.constant 5.000000e-01 : f32
      %36 = vector.broadcast %cst_14 : f32 to vector<1x128xf32>
      %37 = arith.cmpf ogt, %35, %36 : vector<1x128xf32>
      %c0_15 = arith.constant 0 : index
      %c0_16 = arith.constant 0 : index
      %38 = vector.load %arg4[%c0_15, %c0_16] : memref<1x128xf32, #tpu.memory_space<vmem>>, vector<1x128xf32>
      %39 = vector.broadcast %38 : vector<1x128xf32> to vector<8x128xf32>
      %40 = arith.addf %34, %39 : vector<8x128xf32>
      %41 = math.sin %40 : vector<8x128xf32>
      %42 = vector.shape_cast %37 : vector<1x128xi1> to vector<1x128xi1>
      %43 = vector.broadcast %42 : vector<1x128xi1> to vector<8x128xi1>
      %44 = arith.select %43, %41, %34 : vector<8x128xi1>, vector<8x128xf32>
      %45 = arith.truncf %44 : vector<8x128xf32> to vector<8x128xbf16>
      %c0_17 = arith.constant 0 : index
      %c0_18 = arith.constant 0 : index
      %46 = vector.load %arg6[%c0_17, %c0_18] : memref<128x128xbf16, #tpu.memory_space<vmem>>, vector<128x128xbf16>
      %cst_19 = arith.constant dense<0.000000e+00> : vector<8x128xf32>
      %47 = tpu.matmul %45, %46, %cst_19 {dimension_numbers = #tpu.dot_dimension_numbers<[1], [0], [0], [1], [0, 0, 1, 1], [], []>} : vector<8x128xbf16>, vector<128x128xbf16>, vector<8x128xf32> -> vector<8x128xf32>
      %c0_20 = arith.constant 0 : index
      %c0_21 = arith.constant 0 : index
      %48 = vector.load %arg7[%c0_20, %c0_21] : memref<1x128xf32, #tpu.memory_space<vmem>>, vector<1x128xf32>
      %49 = vector.broadcast %48 : vector<1x128xf32> to vector<8x128xf32>
      %50 = arith.addf %47, %49 : vector<8x128xf32>
      %cst_22 = arith.constant 0.000000e+00 : f32
      %51 = vector.broadcast %cst_22 : f32 to vector<8x128xf32>
      %52 = arith.maximumf %50, %51 : vector<8x128xf32>
      %53 = arith.truncf %52 : vector<8x128xf32> to vector<8x128xbf16>
      %c0_23 = arith.constant 0 : index
      %c0_24 = arith.constant 0 : index
      %54 = vector.load %arg8[%c0_23, %c0_24] : memref<128x128xbf16, #tpu.memory_space<vmem>>, vector<128x128xbf16>
      %cst_25 = arith.constant dense<0.000000e+00> : vector<8x128xf32>
      %55 = tpu.matmul %53, %54, %cst_25 {dimension_numbers = #tpu.dot_dimension_numbers<[1], [0], [0], [1], [0, 0, 1, 1], [], []>} : vector<8x128xbf16>, vector<128x128xbf16>, vector<8x128xf32> -> vector<8x128xf32>
      %c0_26 = arith.constant 0 : index
      %c0_27 = arith.constant 0 : index
      %56 = vector.load %arg9[%c0_26, %c0_27] : memref<1x128xf32, #tpu.memory_space<vmem>>, vector<1x128xf32>
      %57 = vector.broadcast %56 : vector<1x128xf32> to vector<8x128xf32>
      %58 = arith.addf %55, %57 : vector<8x128xf32>
      %cst_28 = arith.constant 0.000000e+00 : f32
      %59 = vector.broadcast %cst_28 : f32 to vector<8x128xf32>
      %60 = arith.maximumf %58, %59 : vector<8x128xf32>
      %61 = arith.truncf %60 : vector<8x128xf32> to vector<8x128xbf16>
      %c0_29 = arith.constant 0 : index
      %c0_30 = arith.constant 0 : index
      %62 = vector.load %arg10[%c0_29, %c0_30] : memref<128x128xbf16, #tpu.memory_space<vmem>>, vector<128x128xbf16>
      %cst_31 = arith.constant dense<0.000000e+00> : vector<8x128xf32>
      %63 = tpu.matmul %61, %62, %cst_31 {dimension_numbers = #tpu.dot_dimension_numbers<[1], [0], [0], [1], [0, 0, 1, 1], [], []>} : vector<8x128xbf16>, vector<128x128xbf16>, vector<8x128xf32> -> vector<8x128xf32>
      %c0_32 = arith.constant 0 : index
      %c0_33 = arith.constant 0 : index
      %64 = vector.load %arg11[%c0_32, %c0_33] : memref<1x128xf32, #tpu.memory_space<vmem>>, vector<1x128xf32>
      %65 = vector.broadcast %64 : vector<1x128xf32> to vector<8x128xf32>
      %66 = arith.addf %63, %65 : vector<8x128xf32>
      %cst_34 = arith.constant 0.000000e+00 : f32
      %67 = vector.broadcast %cst_34 : f32 to vector<8x128xf32>
      %68 = arith.maximumf %66, %67 : vector<8x128xf32>
      %c0_35 = arith.constant 0 : index
      %c0_36 = arith.constant 0 : index
      %69 = vector.load %arg12[%c0_35, %c0_36] : memref<128x128xbf16, #tpu.memory_space<vmem>>, vector<128x128xbf16>
      %cst_37 = arith.constant dense<0.000000e+00> : vector<8x128xf32>
      %70 = tpu.matmul %45, %69, %cst_37 {dimension_numbers = #tpu.dot_dimension_numbers<[1], [0], [0], [1], [0, 0, 1, 1], [], []>} : vector<8x128xbf16>, vector<128x128xbf16>, vector<8x128xf32> -> vector<8x128xf32>
      %71 = arith.truncf %68 : vector<8x128xf32> to vector<8x128xbf16>
      %c0_38 = arith.constant 0 : index
      %c0_39 = arith.constant 0 : index
      %72 = vector.load %arg13[%c0_38, %c0_39] : memref<128x128xbf16, #tpu.memory_space<vmem>>, vector<128x128xbf16>
      %cst_40 = arith.constant dense<0.000000e+00> : vector<8x128xf32>
      %73 = tpu.matmul %71, %72, %cst_40 {dimension_numbers = #tpu.dot_dimension_numbers<[1], [0], [0], [1], [0, 0, 1, 1], [], []>} : vector<8x128xbf16>, vector<128x128xbf16>, vector<8x128xf32> -> vector<8x128xf32>
      %74 = arith.addf %70, %73 : vector<8x128xf32>
      %c0_41 = arith.constant 0 : index
      %c0_42 = arith.constant 0 : index
      %75 = vector.load %arg14[%c0_41, %c0_42] : memref<1x128xf32, #tpu.memory_space<vmem>>, vector<1x128xf32>
      %76 = vector.broadcast %75 : vector<1x128xf32> to vector<8x128xf32>
      %77 = arith.addf %74, %76 : vector<8x128xf32>
      %cst_43 = arith.constant 0.000000e+00 : f32
      %78 = vector.broadcast %cst_43 : f32 to vector<8x128xf32>
      %79 = arith.maximumf %77, %78 : vector<8x128xf32>
      %80 = arith.truncf %79 : vector<8x128xf32> to vector<8x128xbf16>
      %c0_44 = arith.constant 0 : index
      %c0_45 = arith.constant 0 : index
      %81 = vector.load %arg15[%c0_44, %c0_45] : memref<128x128xbf16, #tpu.memory_space<vmem>>, vector<128x128xbf16>
      %cst_46 = arith.constant dense<0.000000e+00> : vector<8x128xf32>
      %82 = tpu.matmul %80, %81, %cst_46 {dimension_numbers = #tpu.dot_dimension_numbers<[1], [0], [0], [1], [0, 0, 1, 1], [], []>} : vector<8x128xbf16>, vector<128x128xbf16>, vector<8x128xf32> -> vector<8x128xf32>
      %c0_47 = arith.constant 0 : index
      %c0_48 = arith.constant 0 : index
      %83 = vector.load %arg16[%c0_47, %c0_48] : memref<1x128xf32, #tpu.memory_space<vmem>>, vector<1x128xf32>
      %84 = vector.broadcast %83 : vector<1x128xf32> to vector<8x128xf32>
      %85 = arith.addf %82, %84 : vector<8x128xf32>
      %cst_49 = arith.constant 0.000000e+00 : f32
      %86 = vector.broadcast %cst_49 : f32 to vector<8x128xf32>
      %87 = arith.maximumf %85, %86 : vector<8x128xf32>
      %88 = arith.truncf %87 : vector<8x128xf32> to vector<8x128xbf16>
      %c0_50 = arith.constant 0 : index
      %c0_51 = arith.constant 0 : index
      %89 = vector.load %arg20[%c0_50, %c0_51] : memref<8x128xbf16, #tpu.memory_space<vmem>>, vector<8x128xbf16>
      tpu.vector_store %arg20[%c0_50, %c0_51], %88 {strides = array<i32>} : memref<8x128xbf16, #tpu.memory_space<vmem>>, vector<8x128xbf16>,
    } else {
    }
    %c0 = arith.constant 0 : index
    %c0_1 = arith.constant 0 : index
    %3 = vector.load %arg20[%c0, %c0_1] : memref<8x128xbf16, #tpu.memory_space<vmem>>, vector<8x128xbf16>
    %c0_2 = arith.constant 0 : index
    %c0_3 = arith.constant 0 : index
    %4 = vector.load %arg17[%c0_2, %c0_3] : memref<128x128xbf16, #tpu.memory_space<vmem>>, vector<128x128xbf16>
    %cst = arith.constant dense<0.000000e+00> : vector<8x128xf32>
    %5 = tpu.matmul %3, %4, %cst {dimension_numbers = #tpu.dot_dimension_numbers<[1], [0], [0], [1], [0, 0, 1, 1], [], []>} : vector<8x128xbf16>, vector<128x128xbf16>, vector<8x128xf32> -> vector<8x128xf32>
    %c0_4 = arith.constant 0 : index
    %c0_5 = arith.constant 0 : index
    %6 = vector.load %arg18[%c0_4, %c0_5] : memref<1x128xf32, #tpu.memory_space<vmem>>, vector<1x128xf32>
    %7 = vector.broadcast %6 : vector<1x128xf32> to vector<8x128xf32>
    %8 = arith.addf %5, %7 : vector<8x128xf32>
    %c0_6 = arith.constant 0 : index
    %c0_7 = arith.constant 0 : index
    %9 = vector.load %arg19[%c0_6, %c0_7] : memref<8x128xf32, #tpu.memory_space<vmem>>, vector<8x128xf32>
    tpu.vector_store %arg19[%c0_6, %c0_7], %8 {strides = array<i32>} : memref<8x128xf32, #tpu.memory_space<vmem>>, vector<8x128xf32>,
    return
  }
  func.func @transform_0(%arg0: i32, %arg1: i32) -> (i32, i32) {
    %c0_i32 = arith.constant 0 : i32
    %c0_i32_0 = arith.constant 0 : i32
    return %arg0, %c0_i32 : i32, i32
  }
  func.func @transform_1(%arg0: i32, %arg1: i32) -> (i32, i32) {
    %c0_i32 = arith.constant 0 : i32
    %c0_i32_0 = arith.constant 0 : i32
    %c0_i32_1 = arith.constant 0 : i32
    return %c0_i32, %c0_i32_0 : i32, i32
  }
  func.func @transform_2(%arg0: i32, %arg1: i32) -> (i32, i32) {
    %c0_i32 = arith.constant 0 : i32
    %c0_i32_0 = arith.constant 0 : i32
    %c0_i32_1 = arith.constant 0 : i32
    return %c0_i32, %c0_i32_0 : i32, i32
  }
  func.func @transform_3(%arg0: i32, %arg1: i32) -> (i32, i32) {
    %c0_i32 = arith.constant 0 : i32
    %c0_i32_0 = arith.constant 0 : i32
    %c0_i32_1 = arith.constant 0 : i32
    return %c0_i32, %c0_i32_0 : i32, i32
  }
  func.func @transform_4(%arg0: i32, %arg1: i32) -> (i32, i32) {
    %c0_i32 = arith.constant 0 : i32
    %c0_i32_0 = arith.constant 0 : i32
    %c0_i32_1 = arith.constant 0 : i32
    return %c0_i32, %c0_i32_0 : i32, i32
  }
  func.func @transform_5(%arg0: i32, %arg1: i32) -> (i32, i32) {
    %c0_i32 = arith.constant 0 : i32
    %c0_i32_0 = arith.constant 0 : i32
    %c0_i32_1 = arith.constant 0 : i32
    return %c0_i32, %c0_i32_0 : i32, i32
  }
  func.func @transform_6(%arg0: i32, %arg1: i32) -> (i32, i32) {
    %c0_i32 = arith.constant 0 : i32
    %c0_i32_0 = arith.constant 0 : i32
    %c0_i32_1 = arith.constant 0 : i32
    return %c0_i32, %c0_i32_0 : i32, i32
  }
  func.func @transform_7(%arg0: i32, %arg1: i32) -> (i32, i32) {
    %c0_i32 = arith.constant 0 : i32
    %c0_i32_0 = arith.constant 0 : i32
    %c0_i32_1 = arith.constant 0 : i32
    return %c0_i32, %c0_i32_0 : i32, i32
  }
  func.func @transform_8(%arg0: i32, %arg1: i32) -> (i32, i32) {
    %c0_i32 = arith.constant 0 : i32
    %c0_i32_0 = arith.constant 0 : i32
    %c0_i32_1 = arith.constant 0 : i32
    return %c0_i32, %c0_i32_0 : i32, i32
  }
  func.func @transform_9(%arg0: i32, %arg1: i32) -> (i32, i32) {
    %c0_i32 = arith.constant 0 : i32
    %c0_i32_0 = arith.constant 0 : i32
    %c0_i32_1 = arith.constant 0 : i32
    return %c0_i32, %c0_i32_0 : i32, i32
  }
  func.func @transform_10(%arg0: i32, %arg1: i32) -> (i32, i32) {
    %c0_i32 = arith.constant 0 : i32
    %c0_i32_0 = arith.constant 0 : i32
    %c0_i32_1 = arith.constant 0 : i32
    return %c0_i32, %c0_i32_0 : i32, i32
  }
  func.func @transform_11(%arg0: i32, %arg1: i32) -> (i32, i32) {
    %c0_i32 = arith.constant 0 : i32
    %c0_i32_0 = arith.constant 0 : i32
    %c0_i32_1 = arith.constant 0 : i32
    return %c0_i32, %c0_i32_0 : i32, i32
  }
  func.func @transform_12(%arg0: i32, %arg1: i32) -> (i32, i32) {
    %c0_i32 = arith.constant 0 : i32
    %c0_i32_0 = arith.constant 0 : i32
    %c0_i32_1 = arith.constant 0 : i32
    return %c0_i32, %c0_i32_0 : i32, i32
  }
  func.func @transform_13(%arg0: i32, %arg1: i32) -> (i32, i32) {
    %c0_i32 = arith.constant 0 : i32
    %c0_i32_0 = arith.constant 0 : i32
    %c0_i32_1 = arith.constant 0 : i32
    return %c0_i32, %c0_i32_0 : i32, i32
  }
  func.func @transform_14(%arg0: i32, %arg1: i32) -> (i32, i32) {
    %c0_i32 = arith.constant 0 : i32
    %c0_i32_0 = arith.constant 0 : i32
    %c0_i32_1 = arith.constant 0 : i32
    return %c0_i32, %c0_i32_0 : i32, i32
  }
  func.func @transform_15(%arg0: i32, %arg1: i32) -> (i32, i32) {
    %c0_i32 = arith.constant 0 : i32
    %c0_i32_0 = arith.constant 0 : i32
    %c0_i32_1 = arith.constant 0 : i32
    return %c0_i32, %c0_i32_0 : i32, i32
  }
  func.func @transform_16(%arg0: i32, %arg1: i32) -> (i32, i32) {
    %c0_i32 = arith.constant 0 : i32
    %c0_i32_0 = arith.constant 0 : i32
    %c0_i32_1 = arith.constant 0 : i32
    return %c0_i32, %c0_i32_0 : i32, i32
  }
  func.func @transform_17(%arg0: i32, %arg1: i32) -> (i32, i32) {
    %c0_i32 = arith.constant 0 : i32
    return %arg0, %arg1 : i32, i32
  }
}

</mosaic_0001>

<bundles_post_ra>
// kernel: tpu_custom_call.1
= control target key start
LH: loop header
LB: loop body
LE: loop exit
PB: predicated region body
PF: predicated region fallthrough
CT: control target
= control target key end

     0   :  { %s3017_s0 = inlined_call_operand.vmem [shape: f32[16,4], index: 0, kind: input, shape index: {}]   ;;  %s3018_s1 = inlined_call_operand.vmem [shape: f32[4,128], index: 1, kind: input, shape index: {}]   ;;  %s3019_s2 = inlined_call_operand.vmem [shape: f32[1,128], index: 2, kind: input, shape index: {}]   ;;  %s3020_s3 = inlined_call_operand.vmem [shape: f32[1,128], index: 3, kind: input, shape index: {}]   ;;  %s3021_s4 = inlined_call_operand.hbm [shape: bf16[128,128], index: 4, kind: input, shape index: {}]   ;;  %s3022_s5 = inlined_call_operand.vmem [shape: f32[1,128], index: 5, kind: input, shape index: {}]   ;;  %s3023_s6 = inlined_call_operand.hbm [shape: bf16[128,128], index: 6, kind: input, shape index: {}]   ;;  %s3024_s7 = inlined_call_operand.vmem [shape: f32[1,128], index: 7, kind: input, shape index: {}]   ;;  %s3025_s8 = inlined_call_operand.hbm [shape: bf16[128,128], index: 8, kind: input, shape index: {}]   ;;  %s3026_s9 = inlined_call_operand.vmem [shape: f32[1,128], index: 9, kind: input, shape index: {}]   ;;  %s3027_s10 = inlined_call_operand.hbm [shape: bf16[128,128], index: 10, kind: input, shape index: {}]   ;;  %s3028_s11 = inlined_call_operand.hbm [shape: bf16[128,128], index: 11, kind: input, shape index: {}]   ;;  %s3029_s12 = inlined_call_operand.vmem [shape: f32[1,128], index: 12, kind: input, shape index: {}]   ;;  %s3030_s13 = inlined_call_operand.hbm [shape: bf16[128,128], index: 13, kind: input, shape index: {}]   ;;  %s3031_s14 = inlined_call_operand.vmem [shape: f32[1,128], index: 14, kind: input, shape index: {}]   ;;  %s3032_s15 = inlined_call_operand.hbm [shape: bf16[128,128], index: 15, kind: input, shape index: {}]   ;;  %s3033_s16 = inlined_call_operand.vmem [shape: f32[1,128], index: 16, kind: input, shape index: {}]   ;;  %s3034_s17 = inlined_call_operand.hbm [shape: f32[16,128], index: 17, kind: output, shape index: {}]  }
   0x1   :  { %3044 = sst [smem:[#allocation28_spill]] %s3017_s0 }
   0x2   :  { %3045 = sst [smem:[#allocation29_spill]] %s3018_s1 }
   0x3   :  { %3046 = sst [smem:[#allocation30_spill]] %s3023_s6 }
   0x4   :  { %3047 = sst [smem:[#allocation31_spill]] %s3034_s17 }
   0x5   :  { %22 = vsyncpa [#allocation4], 0 }
   0x6   :  { %23 = vsyncpa [#allocation7], 0 }
   0x7   :  { %24 = vsyncpa [#allocation10], 0 }
   0x8   :  { %25 = vsyncpa [#allocation13], 0 }
   0x9   :  { %26 = vsyncpa [#allocation5], 0 }
   0xa   :  { %28 = vsyncpa [#allocation5 + $0x1], 0  ;;  %s2657_s24 = smov 0   ;;  %s2659_s25 = smov 0  }
   0xb   :  { %s2661_s26 = smov 0   ;;  %s2663_s27 = smov 0  }
   0xc   :  { %s2665_s28 = smov 0   ;;  %s2667_s29 = smov 0  }
   0xd LB: > { %3048 = sst [smem:[#allocation21_spill]] %s2523_s24  ;;  %s1765_s0 = sadd.s32 4294967295, %s2543_s29   ;;  %s2543_s29 = sphi %s2667_s29, %s34_s29   ;;  %s2539_s28 = sphi %s2665_s28, %s3073_s28   ;;  %s2535_s27 = sphi %s2663_s27, %s3072_s27   ;;  %s2531_s26 = sphi %s2661_s26, %s3071_s26   ;;  %s2527_s25 = sphi %s2659_s25, %s3075_s25   ;;  %s2523_s24 = sphi %s2657_s24, %s3074_s24  }
   0xe   : > { %3049 = sst [smem:[#allocation22_spill]] %s2531_s26  ;;  %s1766_s30 = sadd.s32 4294967294, %s2543_s29  }
   0xf   : > { %3050 = sst [smem:[#allocation23_spill]] %s2539_s28  ;;  %s46_s18 = sadd.s32 1, %s2539_s28 }
  0x10   : > { %3051 = sst [smem:[#allocation24_spill]] %s2543_s29  ;;  %s417_s19 = sadd.s32 1, %s2531_s26 }
  0x11   : > { %p48_p0 = scmp.ge.s32.totalorder %s46_s18, 2  ;;  %p427_p1 = scmp.ne.s32.totalorder %s2531_s26, %s2527_s25 }
  0x12   : > { %p428_p2 = scmp.eq.s32.totalorder %s1765_s0, 1  ;;  %p433_p3 = scmp.ne.s32.totalorder %s2527_s25, %s2523_s24 }
  0x13   : > { %s3077_s18 = smov (%p48_p0, %s46_s18), 0  ;;  %p434_p5 = scmp.eq.s32.totalorder %s1766_s30, 1 }
  0x14   : > { %3052 = sst [smem:[#allocation25_spill]] %s3077_s18  ;;  %p2697_p4 = por %p428_p2, %p427_p1 }
  0x15   : > { %s412_s20 = ssub.s32 %s2539_s28, %s3077_s18  ;;  %p1767_p6 = scmp.ge.s32.totalorder %s2543_s29, 1 }
  0x16   : > { %s3053_s1 = scalar_select %p2697_p4, 1, 0 }
  0x17   : > { %p415_p7 = scmp.eq.s32.totalorder %s412_s20, 0  ;;  %p2704_p8 = por %p434_p5, %p433_p3 }
  0x18   : > { %p441_p9 = scmp.lt.s32.totalorder %s2543_s29, 3  ;;  %p2716_p11 = scmp.eq.s32.totalorder %s1765_s0, 0 }
  0x19   : > { %s3054_s21 = scalar_select %p2704_p8, 1, 0 }
  0x1a   : > { %s2710_s22 = scalar_select %p415_p7, %s2531_s26, %s417_s19  }
  0x1b   : > { %3055 = sst [smem:[#allocation26_spill]] %s3054_s21  ;;  %p2712_p10 = pnand %p1767_p6, %p441_p9 }
  0x1c   : > { %3056 = sst [smem:[#allocation27_spill]] %s2710_s22  ;;  %s2545_s30 = smov [#allocation6]  }
  0x1d   : > { %p2094_p12 = pneg %p2712_p10  ;;  %s478_s20 = sshll.u32 %s2545_s30, 4  ;;  %s479_s20 = int_to_ptr.vmem [resolvable:$true] %s478_s20 }
  0x1e   : > { %s2546_s19 = smov [#allocation9]   ;;  %s2280_s22 = scalar_lea.vmem %s479_s20, 1024 }
  0x1f   : > { %p2724_p13 = pnand %p2716_p11, %p2094_p12  ;;  %s510_s28 = sshll.u32 %s2546_s19, 4  ;;  %s511_s28 = int_to_ptr.vmem [resolvable:$true] %s510_s28 }
  0x20   : > { %p2281_p1 = scmp.ne.s32.totalorder %s479_s20, %s2280_s22  ;;  %p2288_p5 = scmp.lt.s32.totalorder %s479_s20, %s479_s20 }
  0x21   : > { %p2730_p0 = pneg %p2724_p13  ;;  %p2289_p6 = scmp.lt.s32.totalorder %s2280_s22, %s2280_s22 }
  0x23   : > { %p2283_p2 = pnand %p2281_p1, %p2730_p0  ;;  %p2290_p7 = por %p2289_p6, %p2288_p5 }
  0x25   : > { %p2284_p3 = pneg %p2283_p2 }
  0x27   : > { %p2291_p9 = pnand %p2290_p7, %p2284_p3 }
  0x29   : > { %2294 = shalt.err (!%p2291_p9)
}
  0x2a   : > { %s2547_s30 = smov 64   ;;  %s2548_s19 = smov 4  }
  0x2b   : > { %s3061_s6 = sld [smem:[#allocation30_spill]]  ;;  %s2306_s29 = scalar_lea.vmem %s511_s28, 1024 }
  0x2c   : > { %p2307_p12 = scmp.ne.s32.totalorder %s511_s28, %s2306_s29  ;;  %p2314_p5 = scmp.lt.s32.totalorder %s511_s28, %s511_s28 }
  0x2d   : > { %p2315_p3 = scmp.lt.s32.totalorder %s2306_s29, %s2306_s29 }
  0x2e   : > { %p2309_p1 = pnand %p2307_p12, %p2730_p0 }
  0x2f   : > { %p2316_p6 = por %p2315_p3, %p2314_p5 }
  0x30   : > { %p2310_p2 = pneg %p2309_p1 }
  0x31   : > { %2100 = dma.hbm_to_vmem [thread:$0]  (!%p2724_p13), %s3061_s6, 1024, %s479_s20, [#allocation7], %s2547_s30, %s2547_s30, %s2548_s19  }
  0x32   : > { %p2317_p7 = pnand %p2316_p6, %p2310_p2 }
  0x34   : > { %2320 = shalt.err (!%p2317_p7)
}
  0x35   : > { %2106 = dma.hbm_to_vmem [thread:$0]  (!%p2724_p13), %s3027_s10, 1024, %s511_s28, [#allocation10], %s2547_s30, %s2547_s30, %s2548_s19  }
  0x36   : > { %s2549_s26 = smov [#allocation12]  }
  0x37   : > { %s539_s21 = sshll.u32 %s2549_s26, 4  ;;  %s540_s21 = int_to_ptr.vmem [resolvable:$true] %s539_s21 }
  0x38   : > { %s2332_s20 = scalar_lea.vmem %s540_s21, 1024  ;;  %p2340_p2 = scmp.lt.s32.totalorder %s540_s21, %s540_s21 }
  0x39   : > { %p2333_p9 = scmp.ne.s32.totalorder %s540_s21, %s2332_s20  ;;  %p2341_p5 = scmp.lt.s32.totalorder %s2332_s20, %s2332_s20 }
  0x3b   : > { %p2335_p12 = pnand %p2333_p9, %p2730_p0  ;;  %p2342_p3 = por %p2341_p5, %p2340_p2 }
  0x3d   : > { %p2336_p1 = pneg %p2335_p12 }
  0x3f   : > { %p2343_p6 = pnand %p2342_p3, %p2336_p1 }
  0x41   : > { %2346 = shalt.err (!%p2343_p6)
}
  0x42   : > { %2112 = dma.hbm_to_vmem [thread:$0]  (!%p2724_p13), %s3030_s13, 1024, %s540_s21, [#allocation13], %s2547_s30, %s2547_s30, %s2548_s19  }
  0x43   : > { %s2550_s29 = smov [#allocation3]   ;;  %s2551_s26 = smov [#allocation8]  }
  0x44   : > { %s462_s22 = sshll.u32 %s2550_s29, 4  ;;  %s494_s6 = sshll.u32 %s2551_s26, 4  ;;  %s463_s22 = int_to_ptr.vmem [resolvable:$true] %s462_s22  ;;  %s495_s6 = int_to_ptr.vmem [resolvable:$true] %s494_s6 }
  0x45   : > { %s2358_s20 = scalar_lea.vmem %s463_s22, 1024  ;;  %p2366_p1 = scmp.lt.s32.totalorder %s463_s22, %s463_s22 }
  0x46   : > { %p2359_p7 = scmp.ne.s32.totalorder %s463_s22, %s2358_s20  ;;  %p2367_p2 = scmp.lt.s32.totalorder %s2358_s20, %s2358_s20 }
  0x48   : > { %p2361_p9 = pnand %p2359_p7, %p2730_p0  ;;  %p2368_p5 = por %p2367_p2, %p2366_p1 }
  0x4a   : > { %p2362_p12 = pneg %p2361_p9 }
  0x4c   : > { %p2369_p3 = pnand %p2368_p5, %p2362_p12 }
  0x4e   : > { %2372 = shalt.err (!%p2369_p3)
}
  0x4f   : > { %2097 = dma.hbm_to_vmem [thread:$0]  (!%p2724_p13), %s3021_s4, 1024, %s463_s22, [#allocation4], %s2547_s30, %s2547_s30, %s2548_s19  }
  0x50   : > { %s2384_s28 = scalar_lea.vmem %s495_s6, 1024  ;;  %p2392_p8 = scmp.lt.s32.totalorder %s495_s6, %s495_s6 }
  0x51   : > { %p2385_p6 = scmp.ne.s32.totalorder %s495_s6, %s2384_s28  ;;  %p2393_p4 = scmp.lt.s32.totalorder %s2384_s28, %s2384_s28 }
  0x53   : > { %p2387_p7 = pnand %p2385_p6, %p2730_p0  ;;  %p2394_p1 = por %p2393_p4, %p2392_p8 }
  0x55   : > { %p2388_p9 = pneg %p2387_p7 }
  0x57   : > { %p2395_p12 = pnand %p2394_p1, %p2388_p9 }
  0x59   : > { %2398 = shalt.err (!%p2395_p12)
}
  0x5a   : > { %2103 = dma.hbm_to_vmem [thread:$0]  (!%p2724_p13), %s3025_s8, 1024, %s495_s6, [#allocation7], %s2547_s30, %s2547_s30, %s2548_s19  }
  0x5b   : > { %s2552_s22 = smov [#allocation11]   ;;  %s2553_s21 = smov [#allocation14]  }
  0x5c   : > { %s523_s20 = sshll.u32 %s2552_s22, 4  ;;  %s555_s17 = sshll.u32 %s2553_s21, 4  ;;  %s524_s20 = int_to_ptr.vmem [resolvable:$true] %s523_s20  ;;  %s556_s17 = int_to_ptr.vmem [resolvable:$true] %s555_s17 }
  0x5d   : > { %s2410_s28 = scalar_lea.vmem %s524_s20, 1024  ;;  %p2418_p5 = scmp.lt.s32.totalorder %s524_s20, %s524_s20 }
  0x5e   : > { %p2411_p4 = scmp.ne.s32.totalorder %s524_s20, %s2410_s28  ;;  %p2419_p3 = scmp.lt.s32.totalorder %s2410_s28, %s2410_s28 }
  0x60   : > { %p2413_p8 = pnand %p2411_p4, %p2730_p0  ;;  %p2420_p6 = por %p2419_p3, %p2418_p5 }
  0x62   : > { %p2414_p2 = pneg %p2413_p8 }
  0x64   : > { %p2421_p7 = pnand %p2420_p6, %p2414_p2 }
  0x66   : > { %2424 = shalt.err (!%p2421_p7)
}
  0x67   : > { %2109 = dma.hbm_to_vmem [thread:$0]  (!%p2724_p13), %s3028_s11, 1024, %s524_s20, [#allocation10], %s2547_s30, %s2547_s30, %s2548_s19  }
  0x68   : > { %s2436_s26 = scalar_lea.vmem %s556_s17, 1024  ;;  %p2444_p4 = scmp.lt.s32.totalorder %s556_s17, %s556_s17 }
  0x69   : > { %p2437_p9 = scmp.ne.s32.totalorder %s556_s17, %s2436_s26  ;;  %p2445_p8 = scmp.lt.s32.totalorder %s2436_s26, %s2436_s26 }
  0x6b   : > { %p2439_p1 = pnand %p2437_p9, %p2730_p0  ;;  %p2446_p5 = por %p2445_p8, %p2444_p4 }
  0x6d   : > { %p2440_p12 = pneg %p2439_p1 }
  0x6f   : > { %p2447_p2 = pnand %p2446_p5, %p2440_p12 }
  0x71   : > { %2450 = shalt.err (!%p2447_p2)
}
  0x72   : > { %2115 = dma.hbm_to_vmem [thread:$0]  (!%p2724_p13), %s3032_s15, 1024, %s556_s17, [#allocation13], %s2547_s30, %s2547_s30, %s2548_s19  }
  0x73   : > { %581 = sbr.rel (%p2712_p10) target bundleno = 1573 (0x625), region = 88 }
  0x78   : > { %2502 = dma.done.wait (%p2716_p11), [#allocation4], 1024  }
  0x79   : > { %2504 = vsyncadd (%p2716_p11), [#allocation4], 4294966272 }
  0x7a   : > { %2506 = dma.done.wait (%p2716_p11), [#allocation7], 2048  }
  0x7b   : > { %2508 = vsyncadd (%p2716_p11), [#allocation7], 4294965248 }
  0x7c   : > { %2510 = dma.done.wait (%p2716_p11), [#allocation10], 2048  }
  0x7d   : > { %2512 = vsyncadd (%p2716_p11), [#allocation10], 4294965248 }
  0x7e   : > { %2514 = dma.done.wait (%p2716_p11), [#allocation13], 2048  }
  0x7f   : > { %2516 = vsyncadd (%p2716_p11), [#allocation13], 4294965248  ;;  %v672_v0 = vlaneseq  ;;  %p656_p10 = scmp.lt.s32.totalorder %s2535_s27, 1  ;;  %v2554_v1 = vmov 0   ;;  %v2555_v2 = vmov 2   ;;  %s3062_s19 = sld [smem:[#allocation28_spill]] }
  0x80   : > { %2204 = vset.pattern.permute.xlu0 %v2554_v1  ;;  %2206 = vset.pattern.permute.xlu1 %v2555_v2  ;;  %v707_v4 = vld [vmem:[%s3020_s3] sm:$0x1]  ;;  %v2556_v9 = vmov 1   ;;  %v2557_v10 = vmov 3   ;;  %v2558_v12 = vmov 0.0   ;;  %v2210_v13 = vld [vmem:[#allocation3 + $0x30] sm:$0xff]  }
  0x81   : > { %s657_s18 = scalar_select %p656_p10, %s2535_s27, 1  ;;  %v2824_v3 = vshrl.u32 %v672_v0, 7  ;;  %vm708_vm0 = vcmp.gt.f32.partialorder %v707_v4, 0.5  ;;  %v2209_v11 = vld [vmem:[#allocation3 + $0x38] sm:$0xff]   ;;  %1920 = vmatprep.subr.bf16.mxu0 %v2558_v12  ;;  %1940 = vmatprep.subr.bf16.mxu1 %v2558_v12  ;;  %v2211_v14 = vld [vmem:[#allocation3 + $0x28] sm:$0xff]   ;;  %vm2559_vm1 = vmmov 0  }
  0x82   : > { %v821_v7 = vsel %vm708_vm0, 1, %v2554_v1  ;;  %1921 = vmatpush3.bf16.msra.mxu0 %v2209_v11  ;;  %1936 = vmatprep.mubr.msk.bf16.mxu0 %vm2559_vm1, %v2558_v12  ;;  %v2212_v15 = vld [vmem:[#allocation3 + $0x20] sm:$0xff]   ;;  %v2213_v16 = vld [vmem:[#allocation3 + $0x18] sm:$0xff]   ;;  %v2214_v17 = vld [vmem:[#allocation3 + $0x10] sm:$0xff]   ;;  %s3063_s29 = sld [smem:[#allocation29_spill]]  ;;  %s653_s6 = sand.u32 1, %s2527_s25  }
  0x83   : > { %s1785_s23 = sshll.u32 %s657_s18, 3  ;;  %v674_v6 = vsub.s32 0, %v2824_v3  ;;  %1922 = vmatprep.subr.bf16.mxu0 %v2558_v12  ;;  %1956 = vmatprep.mubr.msk.bf16.mxu1 %vm2559_vm1, %v2558_v12  ;;  %v2215_v18 = vld [vmem:[#allocation3 + $0x8] sm:$0xff]   ;;  %v2216_v19 = vld [vmem:[#allocation3] sm:$0xff]   ;;  %v2217_v20 = vld [vmem:[#allocation6 + $0x38] sm:$0xff]   ;;  %v683_v26 = vsub.s32 1, %v2824_v3 }
  0x84   : > { %1941 = vmatpush3.bf16.msra.mxu1 %v2217_v20  ;;  %v2218_v21 = vld [vmem:[#allocation6 + $0x30] sm:$0xff]   ;;  %v2219_v22 = vld [vmem:[#allocation6 + $0x28] sm:$0xff]   ;;  %v2220_v23 = vld [vmem:[#allocation6 + $0x20] sm:$0xff]   ;;  %v693_v29 = vsub.s32 2, %v2824_v3  ;;  %v703_v31 = vsub.s32 3, %v2824_v3  ;;  %s1854_s21 = sshll.u32 %s2535_s27, 7 }
  0x85   : > { %s659_s20 = scalar_lea.vmem %s3062_s19, %s1785_s23  ;;  %v2835_v8 = vrot.slane %v821_v7, %v674_v6  ;;  %1942 = vmatprep.subr.bf16.mxu1 %v2558_v12  ;;  %v2221_v24 = vld [vmem:[#allocation6 + $0x18] sm:$0xff]   ;;  %v2222_v25 = vld [vmem:[#allocation6 + $0x10] sm:$0xff]   ;;  %v2560_v57 = vmov 683565275   ;;  %v2561_v59 = vmov 2475754826  }
  0x86   : > { %v665_v5 = vld [vmem:[%s659_s20] sm:$0xff]  ;;  %1923 = vmatpush3.bf16.msra.mxu0 %v2210_v13  ;;  %v2562_v62 = vmov 2131351028   ;;  %v2563_v1 = vmov 2102212464   ;;  %s3064_s19 = sld [smem:[#allocation31_spill]] }
  0x87   : > { %669 = vperm.xlu0 %2204, %v665_v5   ;;  %688 = vperm.xlu1 %2206, %v665_v5   ;;  %v1786_v44 = vld [vmem:[%s3019_s2] ss:$0 sm:$0xff]  ;;  %v2564_v4 = vmov 920167782   ;;  %v2565_v7 = vmov 1326507024  }
  0x88   : > { %1924 = vmatprep.subr.bf16.mxu0 %v2558_v12  ;;  %1943 = vmatpush3.bf16.msra.mxu1 %v2218_v21  ;;  %v666_v27 = vld [vmem:[%s3063_s29] sm:$0xf]  ;;  %vm826_vm13 = vcmp.eq.s32.totalorder %v2835_v8, 1  ;;  %v2224_v8 = vld [vmem:[#allocation6] sm:$0xff]   ;;  %s1784_s29 = sshll.u32 %s653_s6, 3  ;;  %s1614_s17 = scalar_lea.sflag [#allocation5], %s653_s6 }
  0x89   : > { %1944 = vmatprep.subr.bf16.mxu1 %v2558_v12  ;;  %v675_v32 = vrot.slane %v666_v27, %v674_v6  ;;  %v684_v33 = vrot.slane %v666_v27, %v683_v26  ;;  %v694_v34 = vrot.slane %v666_v27, %v693_v29  ;;  %v704_v35 = vrot.slane %v666_v27, %v703_v31  ;;  %s655_s18 = scalar_lea.vmem [#allocation15], %s1784_s29  ;;  %p3065_p13 = scmp.ne.s32.totalorder %s3053_s1, 0 }
  0x8a   : > { %1925 = vmatpush3.bf16.msra.mxu0 %v2211_v14  ;;  %s1628_s23 = sshll.u32 %s655_s18, 4  ;;  %s2566_s27 = smov [#allocation15]   ;;  %s2973_s23 = int_to_ptr.vmem [resolvable:$true] %s1628_s23 }
  0x8b   : > { %2205 = vset.pattern.permute.xlu0 %v2556_v9  ;;  %2207 = vset.pattern.permute.xlu1 %v2557_v10  ;;  %s2451_s28 = scalar_lea.vmem %s2973_s23, 128  ;;  %s2455_s24 = sshll.u32 %s2566_s27, 4  ;;  %s2456_s24 = int_to_ptr.vmem [resolvable:$false] %s2455_s24 }
  0x8c   : > { %678 = vperm.xlu0 %2205, %v665_v5   ;;  %698 = vperm.xlu1 %2207, %v665_v5   ;;  %s2971_s20 = scalar_lea.hbm %s3064_s19, %s1854_s21  ;;  %p2452_p11 = scmp.ne.s32.totalorder %s2973_s23, %s2451_s28 }
  0x8d   : > { %1926 = vmatprep.subr.bf16.mxu0 %v2558_v12  ;;  %1945 = vmatpush3.bf16.msra.mxu1 %v2219_v22  ;;  %s2457_s29 = scalar_lea.vmem %s2456_s24, 256  ;;  %p2458_p6 = scmp.lt.s32.totalorder %s2973_s23, %s2456_s24 }
  0x8e   : > { %1927 = vmatpush3.bf16.msra.mxu0 %v2212_v15  ;;  %1946 = vmatprep.subr.bf16.mxu1 %v2558_v12  ;;  %p2453_p0 = pnand %p2452_p11, %p3065_p13  ;;  %p2459_p7 = scmp.lt.s32.totalorder %s2457_s29, %s2451_s28 }
  0x8f   : > { %1928 = vmatprep.subr.bf16.mxu0 %v2558_v12 }
  0x90   : > { %2208 = vset.pattern.permute.xlu0 %v2557_v10  ;;  %p2454_p3 = pneg %p2453_p0  ;;  %p2460_p9 = por %p2459_p7, %p2458_p6 }
  0x91   : > { %1947 = vmatpush3.bf16.msra.mxu1 %v2220_v23 }
  0x92   : > { %1929 = vmatpush3.bf16.msra.mxu0 %v2213_v16  ;;  %1948 = vmatprep.subr.bf16.mxu1 %v2558_v12  ;;  %p2461_p1 = pnand %p2460_p9, %p2454_p3 }
  0x93   : > { %1930 = vmatprep.subr.bf16.mxu0 %v2558_v12 }
  0x95   : > { %1949 = vmatpush3.bf16.msra.mxu1 %v2221_v24 }
  0x96   : > { %1931 = vmatpush3.bf16.msra.mxu0 %v2214_v17  ;;  %1950 = vmatprep.subr.bf16.mxu1 %v2558_v12 }
  0x97   : > { %1932 = vmatprep.subr.bf16.mxu0 %v2558_v12 }
  0x99   : > { %1951 = vmatpush3.bf16.msra.mxu1 %v2222_v25 }
  0x9a   : > { %1933 = vmatpush3.bf16.msra.mxu0 %v2215_v18  ;;  %1952 = vmatprep.subr.bf16.mxu1 %v2558_v12 }
  0x9b   : > { %1934 = vmatprep.subr.bf16.mxu0 %v2558_v12 }
  0x9e   : > { %1935 = vmatpush3.bf16.msra.mxu0 %v2216_v19 }
  0x9f   : > { %1960 = vmatprep.subr.bf16.mxu0 %v2558_v12 }
 0x102   : > { %v670_v28 = vpop.permute.xlu0 %669  ;;  %v689_v30 = vpop.permute.xlu1 %688 }
 0x103   : > { %v676_v38 = vmul.f32 %v675_v32, %v670_v28  ;;  %v695_v40 = vmul.f32 %v694_v34, %v689_v30 }
 0x107   : > { %v679_v36 = vpop.permute.xlu0 %678  ;;  %v699_v37 = vpop.permute.xlu1 %698 }
 0x108   : > { %v685_v39 = vmul.f32 %v684_v33, %v679_v36  ;;  %v705_v42 = vmul.f32 %v704_v35, %v699_v37 }
 0x10a   : > { %v686_v41 = vadd.f32 %v685_v39, %v676_v38 }
 0x10c   : > { %v696_v43 = vadd.f32 %v695_v40, %v686_v41 }
 0x10e   : > { %v2868_v45 = vadd.f32 %v705_v42, %v696_v43 }
 0x110   : > { %v2871_v46 = vadd.f32 %v1786_v44, %v2868_v45 }
 0x112   : > { %v720_v47 = vand.u32 2139095040, %v2871_v46  ;;  %v717_v51 = vand.u32 2147483647, %v2871_v46  ;;  %vm719_vm9 = vcmp.lt.s32.totalorder %v2871_v46, 0  ;;  %vm809_vm15 = vweird.f32 %v2871_v46 }
 0x114   : > { %v721_v48 = vshrl.u32 %v720_v47, 23  ;;  %v724_v54 = vand.u32 8388607, %v717_v51  ;;  %vm718_vm10 = vcmp.le.f32.partialorder %v717_v51, 0.7853982 }
 0x116   : > { %v1787_v49 = vadd.s32 4294967169, %v721_v48  ;;  %v725_v10 = vor.u32 8388608, %v724_v54 }
 0x118   : > { %v727_v50 = vadd.s32 1, %v1787_v49  ;;  %v765_v25 = vshll.u32 %v725_v10, 8 }
 0x11a   : > { %vm728_vm2 = vcmp.gt.s32.totalorder %v727_v50, 0 }
 0x11b   : > { %v729_v52 = vsel %vm728_vm2, %v727_v50, 0 }
 0x11c   : > { %v731_v53 = vand.u32 31, %v729_v52  ;;  %v730_v56 = vshrl.u32 %v729_v52, 5 }
 0x11e   : > { %v732_v55 = vsub.s32 32, %v731_v53  ;;  %v734_v58 = vshll.u32 %v2560_v57, %v731_v53  ;;  %v737_v60 = vshll.u32 %v2561_v59, %v731_v53  ;;  %v740_v0 = vshll.u32 %v2562_v62, %v731_v53 }
 0x11f   : > { %v743_v3 = vshll.u32 %v2563_v1, %v731_v53  ;;  %v746_v6 = vshll.u32 %v2564_v4, %v731_v53  ;;  %vm749_vm3 = vcmp.lt.s32.totalorder %v730_v56, 1  ;;  %vm752_vm4 = vcmp.lt.s32.totalorder %v730_v56, 4 }
 0x120   : > { %v735_v61 = vshrl.u32 %v2561_v59, %v732_v55  ;;  %v738_v63 = vshrl.u32 %v2562_v62, %v732_v55  ;;  %v741_v2 = vshrl.u32 %v2563_v1, %v732_v55  ;;  %v744_v5 = vshrl.u32 %v2564_v4, %v732_v55 }
 0x121   : > { %v747_v9 = vshrl.u32 %v2565_v7, %v732_v55  ;;  %v733_v20 = vshrl.u32 %v2560_v57, %v732_v55  ;;  %vm751_vm5 = vcmp.lt.s32.totalorder %v730_v56, 3  ;;  %vm750_vm6 = vcmp.lt.s32.totalorder %v730_v56, 2 }
 0x122   : > { %v736_v11 = vor.u32 %v735_v61, %v734_v58  ;;  %v739_v13 = vor.u32 %v738_v63, %v737_v60  ;;  %v742_v14 = vor.u32 %v741_v2, %v740_v0  ;;  %v745_v15 = vor.u32 %v744_v5, %v743_v3 }
 0x123   : > { %v748_v16 = vor.u32 %v747_v9, %v746_v6 }
 0x124   : > { %v754_v17 = vsel %vm752_vm4, %v742_v14, 2102212464  ;;  %v757_v18 = vsel %vm749_vm3, %v736_v11, %v739_v13  ;;  %v761_v19 = vsel %vm749_vm3, %v739_v13, %v742_v14  ;;  %v758_v21 = vsel %vm752_vm4, %v745_v15, 920167782 }
 0x125   : > { %v762_v22 = vsel %vm752_vm4, %v748_v16, 1326507024  ;;  %v759_v23 = vsel %vm751_vm5, %v742_v14, %v758_v21  ;;  %v753_v26 = vsel %vm749_vm3, %v733_v20, %v736_v11  ;;  %v755_v27 = vsel %vm751_vm5, %v739_v13, %v754_v17  ;;  %v2228_v20 = vld [vmem:[#allocation8 + $0x20] sm:$0xff]   ;;  %v2229_v21 = vld [vmem:[#allocation8 + $0x18] sm:$0xff]  }
 0x126   : > { %v763_v24 = vsel %vm751_vm5, %v745_v15, %v762_v22  ;;  %v760_v28 = vsel %vm750_vm6, %v757_v18, %v759_v23  ;;  %v756_v34 = vsel %vm750_vm6, %v753_v26, %v755_v27  ;;  %v2223_v18 = vld [vmem:[#allocation6 + $0x8] sm:$0xff]   ;;  %v2230_v22 = vld [vmem:[#allocation8 + $0x10] sm:$0xff]  }
 0x127   : > { %v764_v29 = vsel %vm750_vm6, %v761_v19, %v763_v24  ;;  %v2880_v32 = vmul.u32.u64.low %v765_v25, %v760_v28  ;;  %v2881_v33 = vmul.u32.u64.high %v765_v25, %v760_v28, %v2880_v32  ;;  %v772_v36 = vmul.u32 %v765_v25, %v756_v34  ;;  %1953 = vmatpush3.bf16.msra.mxu1 %v2223_v18  ;;  %v2226_v19 = vld [vmem:[#allocation8 + $0x30] sm:$0xff]   ;;  %v2231_v23 = vld [vmem:[#allocation8 + $0x8] sm:$0xff]   ;;  %v1791_v24 = vld [vmem:[%s3022_s5] ss:$0 sm:$0xff] }
 0x128   : > { %v2877_v30 = vmul.u32.u64.low %v765_v25, %v764_v29  ;;  %v2878_v31 = vmul.u32.u64.high %v765_v25, %v764_v29, %v2877_v30  ;;  %1954 = vmatprep.subr.bf16.mxu1 %v2558_v12  ;;  %v2242_v34 = vld [vmem:[#allocation11 + $0x30] sm:$0xff]  }
 0x129   : > { %v775_v35 = vadd.s32 1, %v2881_v33  ;;  %v2258_v18 = vld [vmem:[#allocation14 + $0x30] sm:$0xff]  }
 0x12a   : > { %vm774_vm7 = vc.u32 %v2878_v31, %v2880_v32  ;;  %v773_v50 = vadd.s32 %v2880_v32, %v2878_v31  ;;  %v2232_v32 = vld [vmem:[#allocation8] sm:$0xff]  }
 0x12b   : > { %v776_v37 = vsel %vm774_vm7, %v775_v35, %v2881_v33  ;;  %1955 = vmatpush3.bf16.msra.mxu1 %v2224_v8  ;;  %v2241_v33 = vld [vmem:[#allocation11 + $0x38] sm:$0xff]   ;;  %v2243_v35 = vld [vmem:[#allocation11 + $0x28] sm:$0xff]  }
 0x12c   : > { %v777_v38 = vadd.s32 %v776_v37, %v772_v36  ;;  %1980 = vmatprep.subr.bf16.mxu1 %v2558_v12  ;;  %v2244_v36 = vld [vmem:[#allocation11 + $0x20] sm:$0xff]   ;;  %v2245_v37 = vld [vmem:[#allocation11 + $0x18] sm:$0xff]   ;;  %v2259_v8 = vld [vmem:[#allocation14 + $0x28] sm:$0xff]  }
 0x12e   : > { %v778_v39 = vadd.s32 536870912, %v777_v38 }
 0x130   : > { %v779_v40 = vshrl.u32 %v778_v39, 30  ;;  %v1800_v39 = vld [vmem:[%s3024_s7] ss:$0 sm:$0xff] }
 0x132   : > { %v780_v41 = vshll.u32 %v779_v40, 30  ;;  %v803_v0 = vsub.s32 4, %v779_v40 }
 0x134   : > { %v781_v42 = vsub.s32 %v777_v38, %v780_v41  ;;  %v804_v3 = vsel %vm719_vm9, %v803_v0, %v779_v40  ;;  %v2246_v38 = vld [vmem:[#allocation11 + $0x10] sm:$0xff]  }
 0x135   : > { %v806_v4 = vsel %vm718_vm10, 0, %v804_v3 }
 0x136   : > { %v783_v43 = vsub.s32 0, %v781_v42  ;;  %v810_v5 = vadd.s32 3, %v806_v4 }
 0x138   : > { %v1788_v44 = vmin.u32 %v783_v43, %v781_v42  ;;  %v811_v6 = vand.u32 3, %v810_v5  ;;  %v2250_v5 = vld [vmem:[#allocation12 + $0x30] sm:$0xff]  }
 0x13a   : > { %v785_v47 = vclz %v1788_v44  ;;  %vm816_vm11 = vcmp.eq.s32.totalorder %v811_v6, 2  ;;  %vm813_vm12 = vcmp.eq.s32.totalorder %v811_v6, 0  ;;  %vm812_vm14 = vcmp.lt.s32.totalorder %v811_v6, 2  ;;  %v2251_v6 = vld [vmem:[#allocation12 + $0x28] sm:$0xff]  }
 0x13c   : > { %v1789_v48 = vadd.s32 4294967294, %v785_v47  ;;  %v2233_v47 = vld [vmem:[#allocation9 + $0x38] sm:$0xff]  }
 0x13e   : > { %vm1790_vm8 = vcmp.lt.s32.totalorder %v1789_v48, 0 }
 0x13f   : > { %v788_v49 = vsel %vm1790_vm8, 0, %v1789_v48 }
 0x140   : > { %v789_v52 = vsub.s32 32, %v788_v49  ;;  %v793_v53 = vsub.s32 4294967266, %v788_v49  ;;  %v790_v54 = vshll.u32 %v781_v42, %v788_v49 }
 0x142   : > { %v791_v55 = vshrl.u32 %v773_v50, %v789_v52  ;;  %v794_v56 = vadd.s32 127, %v793_v53  ;;  %v2234_v50 = vld [vmem:[#allocation9 + $0x30] sm:$0xff]   ;;  %v2235_v52 = vld [vmem:[#allocation9 + $0x28] sm:$0xff]   ;;  %v2236_v53 = vld [vmem:[#allocation9 + $0x20] sm:$0xff]  }
 0x144   : > { %v792_v57 = vor.u32 %v791_v55, %v790_v54  ;;  %v795_v58 = vshll.u32 %v794_v56, 23  ;;  %v2237_v54 = vld [vmem:[#allocation9 + $0x18] sm:$0xff]   ;;  %v2238_v55 = vld [vmem:[#allocation9 + $0x10] sm:$0xff]   ;;  %v2239_v56 = vld [vmem:[#allocation9 + $0x8] sm:$0xff]  }
 0x146   : > { %v796_v59 = vor.u32 4788187, %v795_v58  ;;  %v799_v61 = vcvt.s32.f32 %v792_v57  ;;  %v2240_v57 = vld [vmem:[#allocation9] sm:$0xff]   ;;  %v2247_v58 = vld [vmem:[#allocation11 + $0x8] sm:$0xff]  }
 0x148   : > { %v797_v60 = vand.u32 2147483647, %v796_v59  ;;  %v2248_v59 = vld [vmem:[#allocation11] sm:$0xff]  }
 0x14a   : > { %v800_v62 = vmul.f32 %v799_v61, %v797_v60  ;;  %v1809_v60 = vld [vmem:[%s3026_s9] ss:$0 sm:$0xff] }
 0x14c   : > { %v801_v63 = vxor.u32 2147483648, %v800_v62 }
 0x14e   : > { %v802_v1 = vsel %vm719_vm9, %v801_v63, %v800_v62 }
 0x14f   : > { %v805_v2 = vsel %vm718_vm10, %v2871_v46, %v802_v1  ;;  %v2225_v46 = vld [vmem:[#allocation8 + $0x38] sm:$0xff]  }
 0x150   : > { %2265 = vcosq.f32 %v805_v2 }
 0x151   : > { %2267 = vsinq.f32 %v805_v2  ;;  %v2249_v2 = vld [vmem:[#allocation12 + $0x38] sm:$0xff]  }
 0x15d   : > { %v2266_v7 = vpop.eup %2265 }
 0x15e   : > { %v2268_v9 = vpop.eup %2267  ;;  %v817_v10 = vxor.u32 2147483648, %v2266_v7 }
 0x15f   : > { %v814_v11 = vxor.u32 2147483648, %v2268_v9 }
 0x160   : > { %v818_v13 = vsel %vm816_vm11, %v817_v10, %v2268_v9  ;;  %v2253_v9 = vld [vmem:[#allocation12 + $0x18] sm:$0xff]   ;;  %v2254_v10 = vld [vmem:[#allocation12 + $0x10] sm:$0xff]  }
 0x161   : > { %v815_v14 = vsel %vm813_vm12, %v2266_v7, %v814_v11  ;;  %v2252_v7 = vld [vmem:[#allocation12 + $0x20] sm:$0xff]  }
 0x162   : > { %v819_v51 = vsel %vm812_vm14, %v815_v14, %v818_v13 }
 0x163   : > { %v820_v15 = vsel %vm809_vm15, nan, %v819_v51 }
 0x164   : > { %v827_v16 = vsel %vm826_vm13, %v820_v15, %v2868_v45  ;;  %v2227_v45 = vld [vmem:[#allocation8 + $0x28] sm:$0xff]  }
 0x165   : > { %v2894_v17 = vpack.c.bf16 %v827_v16, %v827_v16  ;;  %v2255_v15 = vld [vmem:[#allocation12 + $0x8] sm:$0xff]   ;;  %v2256_v16 = vld [vmem:[#allocation12] sm:$0xff]  }
 0x167   : > { %1937 = vmatmul.mubr.bf16.vlgmr.msra.gmra.mxu0 %v2894_v17 }
 0x168   : > { %1976 = vmatprep.mubr.msk.bf16.mxu0 %vm2559_vm1, %v2558_v12  ;;  %1961 = vmatpush3.bf16.msra.mxu0 %v2225_v46  ;;  %v2260_v46 = vld [vmem:[#allocation14 + $0x20] sm:$0xff]  }
 0x169   : > { %1962 = vmatprep.subr.bf16.mxu0 %v2558_v12 }
 0x16c   : > { %1963 = vmatpush3.bf16.msra.mxu0 %v2226_v19 }
 0x16d   : > { %1964 = vmatprep.subr.bf16.mxu0 %v2558_v12 }
 0x170   : > { %1965 = vmatpush3.bf16.msra.mxu0 %v2227_v45  ;;  %v1834_v45 = vld [vmem:[%s3029_s12] ss:$0 sm:$0xff] }
 0x171   : > { %1966 = vmatprep.subr.bf16.mxu0 %v2558_v12 }
 0x174   : > { %1967 = vmatpush3.bf16.msra.mxu0 %v2228_v20 }
 0x175   : > { %1968 = vmatprep.subr.bf16.mxu0 %v2558_v12 }
 0x178   : > { %1969 = vmatpush3.bf16.msra.mxu0 %v2229_v21 }
 0x179   : > { %1970 = vmatprep.subr.bf16.mxu0 %v2558_v12 }
 0x17c   : > { %1971 = vmatpush3.bf16.msra.mxu0 %v2230_v22 }
 0x17d   : > { %1972 = vmatprep.subr.bf16.mxu0 %v2558_v12 }
 0x180   : > { %1973 = vmatpush3.bf16.msra.mxu0 %v2231_v23 }
 0x181   : > { %1974 = vmatprep.subr.bf16.mxu0 %v2558_v12 }
 0x184   : > { %1975 = vmatpush3.bf16.msra.mxu0 %v2232_v32 }
 0x185   : > { %2000 = vmatprep.subr.bf16.mxu0 %v2558_v12 }
 0x227   : > { %v934_v25 = vpop.f32.mrf.mxu0 }
 0x228   : > { %v935_v26 = vadd.f32 %v1791_v24, %v934_v25 }
 0x229   : > { %v1938_v27 = vpop.f32.mrf.mxu0 }
 0x22a   : > { %v940_v28 = vmax.f32 %v935_v26, 0.0  ;;  %v2261_v27 = vld [vmem:[#allocation14 + $0x18] sm:$0xff]  }
 0x22b   : > { %v937_v29 = vpop.f32.mrf.mxu0 }
 0x22c   : > { %v941_v30 = vpack.c.bf16 %v940_v28, %v940_v28  ;;  %v2262_v28 = vld [vmem:[#allocation14 + $0x10] sm:$0xff]   ;;  %v2263_v29 = vld [vmem:[#allocation14 + $0x8] sm:$0xff]  }
 0x22d   : > { %v1939_v31 = vpop.f32.mrf.mxu0 }
 0x22e   : > { %1957 = vmatmul.mubr.bf16.vlgmr.msra.gmra.mxu1 %v941_v30  ;;  %v2264_v30 = vld [vmem:[#allocation14] sm:$0xff]   ;;  %v1835_v31 = vld [vmem:[%s3031_s14] ss:$0 sm:$0xff] }
 0x22f   : > { %1996 = vmatprep.mubr.msk.bf16.mxu1 %vm2559_vm1, %v2558_v12  ;;  %1981 = vmatpush3.bf16.msra.mxu1 %v2241_v33 }
 0x230   : > { %1982 = vmatprep.subr.bf16.mxu1 %v2558_v12 }
 0x233   : > { %1983 = vmatpush3.bf16.msra.mxu1 %v2242_v34 }
 0x234   : > { %1984 = vmatprep.subr.bf16.mxu1 %v2558_v12 }
 0x237   : > { %1985 = vmatpush3.bf16.msra.mxu1 %v2243_v35 }
 0x238   : > { %1986 = vmatprep.subr.bf16.mxu1 %v2558_v12 }
 0x23b   : > { %1987 = vmatpush3.bf16.msra.mxu1 %v2244_v36 }
 0x23c   : > { %1988 = vmatprep.subr.bf16.mxu1 %v2558_v12 }
 0x23f   : > { %1989 = vmatpush3.bf16.msra.mxu1 %v2245_v37 }
 0x240   : > { %1990 = vmatprep.subr.bf16.mxu1 %v2558_v12 }
 0x243   : > { %1991 = vmatpush3.bf16.msra.mxu1 %v2246_v38 }
 0x244   : > { %1992 = vmatprep.subr.bf16.mxu1 %v2558_v12 }
 0x247   : > { %1993 = vmatpush3.bf16.msra.mxu1 %v2247_v58 }
 0x248   : > { %1994 = vmatprep.subr.bf16.mxu1 %v2558_v12 }
 0x24b   : > { %1995 = vmatpush3.bf16.msra.mxu1 %v2248_v59 }
 0x24c   : > { %2020 = vmatprep.subr.bf16.mxu1 %v2558_v12 }
 0x2ee   : > { %v1047_v40 = vpop.f32.mrf.mxu1 }
 0x2ef   : > { %v1048_v41 = vadd.f32 %v1800_v39, %v1047_v40 }
 0x2f0   : > { %v1958_v42 = vpop.f32.mrf.mxu1 }
 0x2f1   : > { %v1053_v43 = vmax.f32 %v1048_v41, 0.0 }
 0x2f2   : > { %v1050_v44 = vpop.f32.mrf.mxu1 }
 0x2f3   : > { %v1054_v48 = vpack.c.bf16 %v1053_v43, %v1053_v43 }
 0x2f4   : > { %v1959_v49 = vpop.f32.mrf.mxu1 }
 0x2f5   : > { %1977 = vmatmul.mubr.bf16.vlgmr.msra.gmra.mxu0 %v1054_v48 }
 0x2f6   : > { %2001 = vmatpush3.bf16.msra.mxu0 %v2233_v47  ;;  %2016 = vmatprep.mubr.msk.bf16.mxu0 %vm2559_vm1, %v2558_v12 }
 0x2f7   : > { %2002 = vmatprep.subr.bf16.mxu0 %v2558_v12 }
 0x2fa   : > { %2003 = vmatpush3.bf16.msra.mxu0 %v2234_v50 }
 0x2fb   : > { %2004 = vmatprep.subr.bf16.mxu0 %v2558_v12 }
 0x2fe   : > { %2005 = vmatpush3.bf16.msra.mxu0 %v2235_v52 }
 0x2ff   : > { %2006 = vmatprep.subr.bf16.mxu0 %v2558_v12 }
 0x302   : > { %2007 = vmatpush3.bf16.msra.mxu0 %v2236_v53 }
 0x303   : > { %2008 = vmatprep.subr.bf16.mxu0 %v2558_v12 }
 0x306   : > { %2009 = vmatpush3.bf16.msra.mxu0 %v2237_v54 }
 0x307   : > { %2010 = vmatprep.subr.bf16.mxu0 %v2558_v12 }
 0x30a   : > { %2011 = vmatpush3.bf16.msra.mxu0 %v2238_v55 }
 0x30b   : > { %2012 = vmatprep.subr.bf16.mxu0 %v2558_v12 }
 0x30e   : > { %2013 = vmatpush3.bf16.msra.mxu0 %v2239_v56 }
 0x30f   : > { %2014 = vmatprep.subr.bf16.mxu0 %v2558_v12 }
 0x312   : > { %2015 = vmatpush3.bf16.msra.mxu0 %v2240_v57 }
 0x313   : > { %2040 = vmatprep.subr.bf16.mxu0 %v2558_v12 }
 0x315   : > { %2017 = vmatmul.mubr.bf16.vlgmr.msra.gmra.mxu0 %v2894_v17  ;;  %v2257_v17 = vld [vmem:[#allocation14 + $0x38] sm:$0xff]  }
 0x316   : > { %2056 = vmatprep.mubr.msk.bf16.mxu0 %vm2559_vm1, %v2558_v12  ;;  %2041 = vmatpush3.bf16.msra.mxu0 %v2257_v17 }
 0x317   : > { %2042 = vmatprep.subr.bf16.mxu0 %v2558_v12 }
 0x31a   : > { %2043 = vmatpush3.bf16.msra.mxu0 %v2258_v18 }
 0x31b   : > { %2044 = vmatprep.subr.bf16.mxu0 %v2558_v12 }
 0x31e   : > { %2045 = vmatpush3.bf16.msra.mxu0 %v2259_v8 }
 0x31f   : > { %2046 = vmatprep.subr.bf16.mxu0 %v2558_v12 }
 0x322   : > { %2047 = vmatpush3.bf16.msra.mxu0 %v2260_v46 }
 0x323   : > { %2048 = vmatprep.subr.bf16.mxu0 %v2558_v12 }
 0x326   : > { %2049 = vmatpush3.bf16.msra.mxu0 %v2261_v27 }
 0x327   : > { %2050 = vmatprep.subr.bf16.mxu0 %v2558_v12 }
 0x32a   : > { %2051 = vmatpush3.bf16.msra.mxu0 %v2262_v28 }
 0x32b   : > { %2052 = vmatprep.subr.bf16.mxu0 %v2558_v12 }
 0x32e   : > { %2053 = vmatpush3.bf16.msra.mxu0 %v2263_v29 }
 0x32f   : > { %2054 = vmatprep.subr.bf16.mxu0 %v2558_v12 }
 0x332   : > { %2055 = vmatpush3.bf16.msra.mxu0 %v2264_v30 }
 0x3b5   : > { %v1160_v61 = vpop.f32.mrf.mxu0 }
 0x3b6   : > { %v1161_v62 = vadd.f32 %v1809_v60, %v1160_v61 }
 0x3b7   : > { %v1978_v63 = vpop.f32.mrf.mxu0 }
 0x3b8   : > { %v1166_v0 = vmax.f32 %v1161_v62, 0.0 }
 0x3b9   : > { %v1163_v1 = vpop.f32.mrf.mxu0 }
 0x3ba   : > { %v1183_v3 = vpack.c.bf16 %v1166_v0, %v1166_v0 }
 0x3bb   : > { %v1979_v4 = vpop.f32.mrf.mxu0 }
 0x3bc   : > { %1997 = vmatmul.mubr.bf16.vlgmr.msra.gmra.mxu1 %v1183_v3 }
 0x3bd   : > { %2021 = vmatpush3.bf16.msra.mxu1 %v2249_v2  ;;  %2036 = vmatprep.mubr.msk.bf16.mxu1 %vm2559_vm1, %v2558_v12 }
 0x3be   : > { %2022 = vmatprep.subr.bf16.mxu1 %v2558_v12 }
 0x3c1   : > { %2023 = vmatpush3.bf16.msra.mxu1 %v2250_v5 }
 0x3c2   : > { %2024 = vmatprep.subr.bf16.mxu1 %v2558_v12 }
 0x3c5   : > { %2025 = vmatpush3.bf16.msra.mxu1 %v2251_v6 }
 0x3c6   : > { %2026 = vmatprep.subr.bf16.mxu1 %v2558_v12 }
 0x3c9   : > { %2027 = vmatpush3.bf16.msra.mxu1 %v2252_v7 }
 0x3ca   : > { %2028 = vmatprep.subr.bf16.mxu1 %v2558_v12 }
 0x3cd   : > { %2029 = vmatpush3.bf16.msra.mxu1 %v2253_v9 }
 0x3ce   : > { %2030 = vmatprep.subr.bf16.mxu1 %v2558_v12 }
 0x3d1   : > { %2031 = vmatpush3.bf16.msra.mxu1 %v2254_v10 }
 0x3d2   : > { %2032 = vmatprep.subr.bf16.mxu1 %v2558_v12 }
 0x3d5   : > { %v1370_v11 = vpop.f32.mrf.mxu0  ;;  %2033 = vmatpush3.bf16.msra.mxu1 %v2255_v15 }
 0x3d6   : > { %2034 = vmatprep.subr.bf16.mxu1 %v2558_v12  ;;  %v1844_v12 = vld [vmem:[%s3033_s16] ss:$0 sm:$0xff] }
 0x3d7   : > { %v2018_v13 = vpop.f32.mrf.mxu0 }
 0x3d9   : > { %v1373_v14 = vpop.f32.mrf.mxu0  ;;  %2035 = vmatpush3.bf16.msra.mxu1 %v2256_v16 }
 0x3db   : > { %v2019_v51 = vpop.f32.mrf.mxu0 }
 0x47c   : > { %v1282_v19 = vpop.f32.mrf.mxu1 }
 0x47d   : > { %v1371_v20 = vadd.f32 %v1370_v11, %v1282_v19 }
 0x47e   : > { %v1998_v21 = vpop.f32.mrf.mxu1 }
 0x47f   : > { %v1383_v22 = vadd.f32 %v1834_v45, %v1371_v20 }
 0x480   : > { %v1285_v23 = vpop.f32.mrf.mxu1 }
 0x481   : > { %v1384_v24 = vmax.f32 %v1383_v22, 0.0 }
 0x482   : > { %v1999_v25 = vpop.f32.mrf.mxu1 }
 0x483   : > { %v1385_v26 = vpack.c.bf16 %v1384_v24, %v1384_v24 }
 0x485   : > { %2037 = vmatmul.mubr.bf16.vlgmr.msra.gmra.mxu1 %v1385_v26 }
 0x545   : > { %v1491_v32 = vpop.f32.mrf.mxu1 }
 0x546   : > { %v1492_v33 = vadd.f32 %v1835_v31, %v1491_v32 }
 0x547   : > { %v2038_v34 = vpop.f32.mrf.mxu1 }
 0x548   : > { %v1497_v35 = vmax.f32 %v1492_v33, 0.0 }
 0x549   : > { %v1494_v36 = vpop.f32.mrf.mxu1 }
 0x54a   : > { %v1498_v37 = vpack.c.bf16 %v1497_v35, %v1497_v35 }
 0x54b   : > { %v2039_v38 = vpop.f32.mrf.mxu1 }
 0x54c   : > { %1499 = vst [vmem:[#allocation2] sm:$0xf] %v1498_v37 }
 0x553   : > { %v1500_v39 = vld [vmem:[#allocation2] sm:$0xf] }
 0x554   : > { %2057 = vmatmul.mubr.bf16.vlgmr.msra.gmra.mxu0 %v1500_v39 }
 0x614   : > { %v1606_v40 = vpop.f32.mrf.mxu0 }
 0x615   : > { %v1607_v41 = vadd.f32 %v1844_v12, %v1606_v40 }
 0x616   : > { %v2058_v42 = vpop.f32.mrf.mxu0 }
 0x617   : > { %1612 = vst [vmem:[%s655_s18] sm:$0xff] %v1607_v41 }
 0x618   : > { %v1609_v43 = vpop.f32.mrf.mxu0 }
 0x619   : > { %2464 = shalt.err (!%p2461_p1)
}
 0x61a   : > { %s2465_s26 = scalar_lea.hbm %s2971_s20, 128  ;;  %s2469_s21 = scalar_lea.hbm %s3064_s19, 256 }
 0x61b   : > { %p2466_p12 = scmp.ne.s32.totalorder %s2971_s20, %s2465_s26  ;;  %p2470_p5 = scmp.lt.s32.totalorder %s2971_s20, %s3064_s19 }
 0x61c   : > { %p2471_p2 = scmp.lt.s32.totalorder %s2469_s21, %s2465_s26 }
 0x61d   : > { %p2467_p4 = pnand %p2466_p12, %p3065_p13 }
 0x61e   : > { %p2472_p10 = por %p2471_p2, %p2470_p5 }
 0x61f   : > { %p2468_p8 = pneg %p2467_p4 }
 0x621   : > { %p2473_p11 = pnand %p2472_p10, %p2468_p8 }
 0x623   : > { %2476 = shalt.err (!%p2473_p11)
}
 0x624   : > { %2092 = dma.vmem_to_hbm [thread:$0]  (%p3065_p13), %s2973_s23, 128, %s2971_s20, %s1614_s17   ;;  %v2059_v44 = vpop.f32.mrf.mxu0 }
 0x625 PF: > { %s3066_s30 = sld [smem:[#allocation24_spill]] }
 0x626   : > { %s3067_s28 = sld [smem:[#allocation21_spill]] }
 0x627   : > { %s3068_s27 = sld [smem:[#allocation26_spill]] }
 0x62b   : > { %p2134_p0 = scmp.ge.s32.totalorder %s3066_s30, 2 }
 0x62c   : > { %s1640_s24 = sand.u32 1, %s3067_s28  }
 0x62d   : > { %p3069_p3 = scmp.ne.s32.totalorder %s3068_s27, 0  ;;  %s1641_s29 = scalar_lea.sflag [#allocation5], %s1640_s24 }
 0x62f   : > { %p2117_p6 = pnand %p2134_p0, %p3069_p3 }
 0x631   : > { %p2118_p7 = pneg %p2117_p6 }
 0x633   : > { %2518 = dma.done.wait (%p2118_p7), %s1641_s29, 128  }
 0x634   : > { %2520 = vsyncadd (%p2118_p7), %s1641_s29, 4294967168  ;;  %s34_s29 = sadd.s32 1, %s3066_s30   ;;  %s3070_s1 = sld [smem:[#allocation22_spill]] }
 0x635   : > { %p31_p9 = scmp.ge.s32.totalorder %s34_s29, 4   ;;  %s3071_s26 = sld [smem:[#allocation27_spill]] }
 0x636   : > { %s3072_s27 = sld [smem:[#allocation23_spill]]  ;;  %s3074_s24 = smov %s2527_s25 }
 0x637   : > { %s3073_s28 = sld [smem:[#allocation25_spill]]  ;;  %33 = sbr.rel (!%p31_p9) target bundleno = 13 (0xd), region = 156 }
 0x63a   : > { %s3075_s25 = smov %s3070_s1 }
 0x63c   :  { %1646 = vsyncpa [#allocation4], 1 }
 0x63d   :  { %1648 = vsyncpa [#allocation4 + $0x1], 1 }
 0x63e   :  { %1649 = vsyncpa [#allocation7], 1 }
 0x63f   :  { %1650 = vsyncpa [#allocation10], 1 }
 0x640   :  { %1651 = vsyncpa [#allocation13], 1 }
 0x641   :  { %1652 = vsyncpa [#allocation5], 1 }
 0x642   :  { %1654 = vsyncpa [#allocation5 + $0x1], 1 }

</bundles_post_ra>
